<compile_context>
chip_gen: v7x
topology: tpu7x:2x2x1
jax: 0.10.0
libtpu: 0.0.40
codegen_flags: <defaults>
</compile_context>

<pallas_src>
import jax
import jax.numpy as jnp
from jax.experimental import pallas as pl
from jax.experimental.pallas import tpu as pltpu


def _round_up(x: int, m: int) -> int:
    return ((x + m - 1) // m) * m


def _make_critic_kernel(num_hidden_layers: int):
    """Fused MLP-forward kernel for one batch tile.

    Ref order: x_ref, (w0, b0, ..., w_{L-1}, b_{L-1}), w_head_row, b_head, out_ref
    """

    def kernel(*refs):
        x_ref = refs[0]
        param_refs = refs[1:-1]
        out_ref = refs[-1]

        h = x_ref[...]  # f32 [TILE_B, in]
        for i in range(num_hidden_layers):
            w = param_refs[2 * i][...]          # bf16 [in, out]  (MXU input)
            b = param_refs[2 * i + 1][...]      # f32  [1, out]
            acc = jnp.dot(h.astype(jnp.bfloat16), w,
                          preferred_element_type=jnp.float32)   # MXU, f32 acc
            h = jnp.maximum(acc + b, 0.0)       # f32 bias-add + ReLU on VPU

        # Head Linear(H, 1): multiply + lane reduce on VPU/XLU instead of an
        # N=1 MXU matmul.
        w_head = param_refs[2 * num_hidden_layers][...]      # f32 [1, H]
        b_head = param_refs[2 * num_hidden_layers + 1][...]  # f32 [1, 1]
        out = jnp.sum(h * w_head, axis=-1, keepdims=True) + b_head
        out_ref[...] = out.astype(out_ref.dtype)

    return kernel


def _vmem_limit_bytes(tile_b: int, state_dim: int, params) -> int:
    param_bytes = sum(int(p.size) * p.dtype.itemsize for p in params)
    io_bytes = tile_b * state_dim * 4 + tile_b * 4
    widest = max(int(p.shape[-1]) for p in params)
    act_bytes = tile_b * widest * 4
    # Everything double-buffered by the pipeline + activation scratch + headroom.
    est = 4 * (param_bytes + io_bytes + act_bytes)
    return int(min(max(est, 4 << 20), 32 << 20))  # clamp to [4 MiB, 32 MiB]


def critic_forward(x, params, *, tile_b: int = 512):
    """Fused Critic forward pass.

    Args:
      x: [batch, state_dim] float32.
      params: flat list [w0, b0, ..., w_{L-1}, b_{L-1}, w_head, b_head] with
              hidden w_i: bf16 [in, out], b_i: f32 [1, out],
              w_head: f32 [1, hidden_last], b_head: f32 [1, 1].
    Returns:
      [batch, 1] float32 value estimates.
    """
    num_hidden_layers = (len(params) - 2) // 2
    batch, state_dim = x.shape

    # Batch tile: multiple of 8, at most `tile_b`, covering small batches.
    tb = min(_round_up(tile_b, 8), max(8, _round_up(batch, 8)))
    padded = _round_up(batch, tb)
    if padded != batch:
        x = jnp.pad(x, ((0, padded - batch), (0, 0)))

    grid = (pl.cdiv(padded, tb),)
    kernel = _make_critic_kernel(num_hidden_layers)

    x_spec = pl.BlockSpec((tb, state_dim), lambda i: (i, 0))
    # Full-array blocks that always map to block (0, 0) -> params stay resident
    # in VMEM and are DMA'd exactly once across all grid steps.
    param_specs = [pl.BlockSpec(tuple(p.shape), lambda i: (0, 0)) for p in params]
    out_spec = pl.BlockSpec((tb, 1), lambda i: (i, 0))

    out = pl.pallas_call(
        kernel,
        out_shape=jax.ShapeDtypeStruct((padded, 1), jnp.float32),
        grid=grid,
        in_specs=[x_spec] + param_specs,
        out_specs=out_spec,
        compiler_params=pltpu.CompilerParams(
            dimension_semantics=("parallel",),
            vmem_limit_bytes=_vmem_limit_bytes(tb, state_dim, params),
        ),
    )(x, *params)

    return out[:batch]


def init_critic_params(key, state_dim, hidden_layer_list):
    """Init mimicking nn.Linear's default U(-1/sqrt(fan_in), +1/sqrt(fan_in)).

    Hidden weights are stored in bf16 (MXU inputs); biases and the head stay f32.
    """
    dims = [state_dim] + list(hidden_layer_list) + [1]
    params = []
    for i in range(len(dims) - 1):
        fan_in, fan_out = dims[i], dims[i + 1]
        key, kw, kb = jax.random.split(key, 3)
        bound = 1.0 / jnp.sqrt(jnp.float32(fan_in))
        w = jax.random.uniform(
            kw, (fan_in, fan_out), jnp.float32, minval=-bound, maxval=bound
        )
        b = jax.random.uniform(
            kb, (1, fan_out), jnp.float32, minval=-bound, maxval=bound
        )
        is_head = i == len(dims) - 2
        if is_head:
            params += [w.reshape(1, fan_in), b]        # head: f32 [1, H], [1, 1]
        else:
            params += [w.astype(jnp.bfloat16), b]      # hidden: bf16 W, f32 b
    return params


def critic_forward_ref(x, params):
    """Pure-JAX reference computing the same math (bf16 MXU inputs, f32 acc)."""
    num_hidden_layers = (len(params) - 2) // 2
    h = x
    for i in range(num_hidden_layers):
        w = params[2 * i]
        b = params[2 * i + 1]
        acc = jnp.dot(h.astype(jnp.bfloat16), w, preferred_element_type=jnp.float32)
        h = jnp.maximum(acc + b, 0.0)
    w_head, b_head = params[-2], params[-1]
    return jnp.sum(h * w_head, axis=-1, keepdims=True) + b_head


if __name__ == "__main__":
    # Pendulum-v1: state_dim = 3; two hidden layers of width 32.
    state_dim = 3
    hidden_layer_list = [32, 32]

    key = jax.random.PRNGKey(0)
    key, kp = jax.random.split(key)
    params = init_critic_params(kp, state_dim, hidden_layer_list)

    # Small case (batch = 8): single grid step.
    key, kx = jax.random.split(key)
    x_small = jax.random.normal(kx, (8, state_dim), jnp.float32)
    out_small = jax.block_until_ready(critic_forward(x_small, params))
    ref_small = critic_forward_ref(x_small, params)
    assert out_small.shape == (8, 1), out_small.shape
    assert jnp.allclose(out_small, ref_small, atol=1e-4, rtol=1e-4), (
        out_small, ref_small)

    # Larger ragged case: exercises batch tiling, padding and multi-step grid.
    key, kx2 = jax.random.split(key)
    x_big = jax.random.normal(kx2, (1000, state_dim), jnp.float32)
    out_big = jax.block_until_ready(critic_forward(x_big, params, tile_b=256))
    ref_big = critic_forward_ref(x_big, params)
    assert out_big.shape == (1000, 1), out_big.shape
    assert jnp.allclose(out_big, ref_big, atol=1e-4, rtol=1e-4)

    print("KERNEL_OK")
</pallas_src>

<mosaic_0001>
module attributes {stable_mosaic.version = 11 : i64} {
  func.func @kernel(%arg0: i32, %arg1: memref<8x3xf32, #tpu.memory_space<vmem>>, %arg2: memref<3x32xbf16, #tpu.memory_space<vmem>>, %arg3: memref<1x32xf32, #tpu.memory_space<vmem>>, %arg4: memref<32x32xbf16, #tpu.memory_space<vmem>>, %arg5: memref<1x32xf32, #tpu.memory_space<vmem>>, %arg6: memref<1x32xf32, #tpu.memory_space<vmem>>, %arg7: memref<1x1xf32, #tpu.memory_space<vmem>>, %arg8: memref<8x1xf32, #tpu.memory_space<vmem>>) attributes {dimension_semantics = [#tpu.dimension_semantics<parallel>], iteration_bounds = array<i64: 1>, scalar_prefetch = 0 : i64, scratch_operands = 0 : i64, tpu.core_type = #tpu.core_type<tc>, window_params = [{transform_indices = @transform_0, window_bounds = array<i64: 8, 3>}, {pipeline_mode = #tpu.pipeline_mode<synchronous>, transform_indices = @transform_1, window_bounds = array<i64: 3, 32>}, {pipeline_mode = #tpu.pipeline_mode<synchronous>, transform_indices = @transform_2, window_bounds = array<i64: 1, 32>}, {pipeline_mode = #tpu.pipeline_mode<synchronous>, transform_indices = @transform_3, window_bounds = array<i64: 32, 32>}, {pipeline_mode = #tpu.pipeline_mode<synchronous>, transform_indices = @transform_4, window_bounds = array<i64: 1, 32>}, {pipeline_mode = #tpu.pipeline_mode<synchronous>, transform_indices = @transform_5, window_bounds = array<i64: 1, 32>}, {pipeline_mode = #tpu.pipeline_mode<synchronous>, transform_indices = @transform_6, window_bounds = array<i64: 1, 1>}, {transform_indices = @transform_7, window_bounds = array<i64: 8, 1>}]} {
    %c0 = arith.constant 0 : index
    %c0_0 = arith.constant 0 : index
    %0 = vector.load %arg1[%c0, %c0_0] : memref<8x3xf32, #tpu.memory_space<vmem>>, vector<8x3xf32>
    %c0_1 = arith.constant 0 : index
    %c0_2 = arith.constant 0 : index
    %1 = vector.load %arg2[%c0_1, %c0_2] : memref<3x32xbf16, #tpu.memory_space<vmem>>, vector<3x32xbf16>
    %c0_3 = arith.constant 0 : index
    %c0_4 = arith.constant 0 : index
    %2 = vector.load %arg3[%c0_3, %c0_4] : memref<1x32xf32, #tpu.memory_space<vmem>>, vector<1x32xf32>
    %3 = arith.truncf %0 : vector<8x3xf32> to vector<8x3xbf16>
    %cst = arith.constant dense<0.000000e+00> : vector<8x32xf32>
    %4 = tpu.matmul %3, %1, %cst {dimension_numbers = #tpu.dot_dimension_numbers<[1], [0], [0], [1], [0, 0, 1, 1], [], []>} : vector<8x3xbf16>, vector<3x32xbf16>, vector<8x32xf32> -> vector<8x32xf32>
    %5 = vector.broadcast %2 : vector<1x32xf32> to vector<8x32xf32>
    %6 = arith.addf %4, %5 : vector<8x32xf32>
    %cst_5 = arith.constant 0.000000e+00 : f32
    %7 = vector.broadcast %cst_5 : f32 to vector<8x32xf32>
    %8 = arith.maximumf %6, %7 : vector<8x32xf32>
    %c0_6 = arith.constant 0 : index
    %c0_7 = arith.constant 0 : index
    %9 = vector.load %arg4[%c0_6, %c0_7] : memref<32x32xbf16, #tpu.memory_space<vmem>>, vector<32x32xbf16>
    %c0_8 = arith.constant 0 : index
    %c0_9 = arith.constant 0 : index
    %10 = vector.load %arg5[%c0_8, %c0_9] : memref<1x32xf32, #tpu.memory_space<vmem>>, vector<1x32xf32>
    %11 = arith.truncf %8 : vector<8x32xf32> to vector<8x32xbf16>
    %cst_10 = arith.constant dense<0.000000e+00> : vector<8x32xf32>
    %12 = tpu.matmul %11, %9, %cst_10 {dimension_numbers = #tpu.dot_dimension_numbers<[1], [0], [0], [1], [0, 0, 1, 1], [], []>} : vector<8x32xbf16>, vector<32x32xbf16>, vector<8x32xf32> -> vector<8x32xf32>
    %13 = vector.broadcast %10 : vector<1x32xf32> to vector<8x32xf32>
    %14 = arith.addf %12, %13 : vector<8x32xf32>
    %cst_11 = arith.constant 0.000000e+00 : f32
    %15 = vector.broadcast %cst_11 : f32 to vector<8x32xf32>
    %16 = arith.maximumf %14, %15 : vector<8x32xf32>
    %c0_12 = arith.constant 0 : index
    %c0_13 = arith.constant 0 : index
    %17 = vector.load %arg6[%c0_12, %c0_13] : memref<1x32xf32, #tpu.memory_space<vmem>>, vector<1x32xf32>
    %c0_14 = arith.constant 0 : index
    %c0_15 = arith.constant 0 : index
    %18 = vector.load %arg7[%c0_14, %c0_15] : memref<1x1xf32, #tpu.memory_space<vmem>>, vector<1x1xf32>
    %19 = vector.broadcast %17 : vector<1x32xf32> to vector<8x32xf32>
    %20 = arith.mulf %16, %19 : vector<8x32xf32>
    %cst_16 = arith.constant dense<0.000000e+00> : vector<8xf32>
    %21 = vector.multi_reduction <add>, %20, %cst_16 [1] : vector<8x32xf32> to vector<8xf32>
    %22 = vector.shape_cast %21 : vector<8xf32> to vector<8x1xf32>
    %23 = vector.broadcast %18 : vector<1x1xf32> to vector<8x1xf32>
    %24 = arith.addf %22, %23 : vector<8x1xf32>
    %c0_17 = arith.constant 0 : index
    %c0_18 = arith.constant 0 : index
    %25 = vector.load %arg8[%c0_17, %c0_18] : memref<8x1xf32, #tpu.memory_space<vmem>>, vector<8x1xf32>
    tpu.vector_store %arg8[%c0_17, %c0_18], %24 {strides = array<i32>} : memref<8x1xf32, #tpu.memory_space<vmem>>, vector<8x1xf32>,
    return
  }
  func.func @transform_0(%arg0: i32) -> (i32, i32) {
    %c0_i32 = arith.constant 0 : i32
    %c0_i32_0 = arith.constant 0 : i32
    return %arg0, %c0_i32 : i32, i32
  }
  func.func @transform_1(%arg0: i32) -> (i32, i32) {
    %c0_i32 = arith.constant 0 : i32
    %c0_i32_0 = arith.constant 0 : i32
    %c0_i32_1 = arith.constant 0 : i32
    return %c0_i32, %c0_i32_0 : i32, i32
  }
  func.func @transform_2(%arg0: i32) -> (i32, i32) {
    %c0_i32 = arith.constant 0 : i32
    %c0_i32_0 = arith.constant 0 : i32
    %c0_i32_1 = arith.constant 0 : i32
    return %c0_i32, %c0_i32_0 : i32, i32
  }
  func.func @transform_3(%arg0: i32) -> (i32, i32) {
    %c0_i32 = arith.constant 0 : i32
    %c0_i32_0 = arith.constant 0 : i32
    %c0_i32_1 = arith.constant 0 : i32
    return %c0_i32, %c0_i32_0 : i32, i32
  }
  func.func @transform_4(%arg0: i32) -> (i32, i32) {
    %c0_i32 = arith.constant 0 : i32
    %c0_i32_0 = arith.constant 0 : i32
    %c0_i32_1 = arith.constant 0 : i32
    return %c0_i32, %c0_i32_0 : i32, i32
  }
  func.func @transform_5(%arg0: i32) -> (i32, i32) {
    %c0_i32 = arith.constant 0 : i32
    %c0_i32_0 = arith.constant 0 : i32
    %c0_i32_1 = arith.constant 0 : i32
    return %c0_i32, %c0_i32_0 : i32, i32
  }
  func.func @transform_6(%arg0: i32) -> (i32, i32) {
    %c0_i32 = arith.constant 0 : i32
    %c0_i32_0 = arith.constant 0 : i32
    %c0_i32_1 = arith.constant 0 : i32
    return %c0_i32, %c0_i32_0 : i32, i32
  }
  func.func @transform_7(%arg0: i32) -> (i32, i32) {
    %c0_i32 = arith.constant 0 : i32
    %c0_i32_0 = arith.constant 0 : i32
    return %arg0, %c0_i32 : i32, i32
  }
}

</mosaic_0001>

<bundles_post_ra>
// kernel: tpu_custom_call.1
= control target key start
LH: loop header
LB: loop body
LE: loop exit
PB: predicated region body
PF: predicated region fallthrough
CT: control target
= control target key end

     0   :  { %vm43_vm0 = vcmask 1040384   ;;  %vm44_vm1 = vcmask 1041408   ;;  %v217_v0 = vmov 0.0   ;;  %v218_v2 = vmov 65535   ;;  %s289_s1 = inlined_call_operand.vmem [shape: bf16[3,32], index: 1, kind: input, shape index: {}]   ;;  %s290_s0 = inlined_call_operand.vmem [shape: f32[8,3], index: 0, kind: input, shape index: {}]   ;;  %s291_s3 = inlined_call_operand.vmem [shape: bf16[32,32], index: 3, kind: input, shape index: {}]   ;;  %s292_s2 = inlined_call_operand.vmem [shape: f32[1,32], index: 2, kind: input, shape index: {}]   ;;  %s293_s6 = inlined_call_operand.<no memory space> [shape: f32[1,1], index: 6, kind: input, shape index: {}]   ;;  %s294_s4 = inlined_call_operand.vmem [shape: f32[1,32], index: 4, kind: input, shape index: {}]   ;;  %s295_s5 = inlined_call_operand.vmem [shape: f32[1,32], index: 5, kind: input, shape index: {}]   ;;  %s296_s7 = inlined_call_operand.vmem [shape: f32[8,1], index: 7, kind: output, shape index: {}]  }
   0x1   :  { %198 = vmatprep.subr.bf16.mxu0 %v217_v0  ;;  %v30_v1 = vld [vmem:[%s289_s1] sm:$0x3]  ;;  %v45_v3 = vsel %vm43_vm0, 4294967295, %v218_v2  ;;  %204 = vmatprep.subr.bf16.mxu1 %v217_v0  ;;  %vm219_vm2 = vmmov 0   ;;  %vm39_vm3 = vcmask 23552   ;;  %v216_v9 = vld [vmem:[%s291_s3 + $0x8] sm:$0xff]   ;;  %v12_v18 = vstv %s293_s6 }
   0x2   :  { %v29_v4 = vld [vmem:[%s290_s0] sm:$0xff]  ;;  %v46_v5 = vsel %vm44_vm1, %v45_v3, 0  ;;  %200 = vmatprep.mubr.msk.bf16.mxu0 %vm219_vm2, %v217_v0  ;;  %208 = vmatprep.mubr.msk.bf16.mxu1 %vm219_vm2, %v217_v0  ;;  %vm115_vm4 = vcmask 261120   ;;  %13 = vst [vmem:[#allocation2] sm:$0x1] %v12_v18  ;;  %vm179_vm5 = vcmask 7168  }
   0x3   :  { %v48_v6 = vand.u32 %v46_v5, %v30_v1  ;;  %v32_v7 = vpack.c.bf16 %v29_v4, %v29_v4  ;;  %v215_v8 = vld [vmem:[%s291_s3] sm:$0xff]  }
   0x4   :  { %205 = vmatpush3.bf16.msra.mxu1 %v215_v8  ;;  %v185_v10 = vld [vmem:[%s292_s2] ss:$0 sm:$0xff] }
   0x5   :  { %199 = vmatpush3.bf16.msra.mxu0 %v48_v6  ;;  %206 = vmatprep.subr.bf16.mxu1 %v217_v0  ;;  %v187_v19 = vld [vmem:[%s294_s4] ss:$0 sm:$0xff] }
   0x6   :  { %v191_v24 = vld [vmem:[%s295_s5] ss:$0 sm:$0xff] }
   0x8   :  { %201 = vmatmul.mubr.msk.bf16.vlgmr.msra.gmra.mrb[0].mxu0 %vm39_vm3, %v32_v7  ;;  %207 = vmatpush3.bf16.msra.mxu1 %v216_v9 }
   0x9   :  { %v192_v29 = vld [vmem:[#allocation2] ss:$0 sm:$0xff] }
  0xdb   :  { %v84_v11 = vpop.f32.mrb[0].mxu0 }
  0xdc   :  { %v85_v12 = vadd.f32 %v185_v10, %v84_v11  ;;  %v202_v13 = vpop.f32.mrb[1].mxu0 }
  0xdd   :  { %v87_v14 = vpop.f32.mrb[2].mxu0 }
  0xde   :  { %v90_v15 = vmax.f32 %v85_v12, 0.0  ;;  %v203_v16 = vpop.f32.mrb[3].mxu0 }
  0xe0   :  { %v96_v17 = vpack.c.bf16 %v90_v15, %v90_v15 }
  0xe2   :  { %209 = vmatmul.mubr.msk.bf16.vlgmr.msra.gmra.mrb[0].mxu1 %vm115_vm4, %v96_v17 }
 0x1b5   :  { %v153_v20 = vpop.f32.mrb[0].mxu1 }
 0x1b6   :  { %v154_v21 = vadd.f32 %v187_v19, %v153_v20  ;;  %v210_v22 = vpop.f32.mrb[1].mxu1 }
 0x1b7   :  { %v156_v23 = vpop.f32.mrb[2].mxu1 }
 0x1b8   :  { %v159_v25 = vmax.f32 %v154_v21, 0.0  ;;  %v211_v26 = vpop.f32.mrb[3].mxu1 }
 0x1ba   :  { %v168_v27 = vmul.f32 %v191_v24, %v159_v25 }
 0x1bc   :  { %v169_v28 = vsel %vm115_vm4, %v168_v27, 0.0 }
 0x1bd   :  { %170 = vadd.xlane.f32.xlu0 %v169_v28 }
 0x24a   :  { %v171_v30 = vpop.xlane.xlu0 %170 }
 0x24b   :  { %v178_v31 = vadd.f32 %v192_v29, %v171_v30 }
 0x24d   :  { %180 = vst.msk [vmem:[%s296_s7] sm:$0xff] %vm179_vm5, %v178_v31 }

</bundles_post_ra>
